<compile_context>
chip_gen: v6e
topology: v6e:2x2x1
jax: 0.10.0
libtpu: 0.0.40
codegen_flags: <defaults>
</compile_context>

<pallas_src>
import jax
import jax.numpy as jnp
from jax.experimental import pallas as pl
from jax.experimental.pallas import tpu as pltpu


def _policy_kernel(x_ref, w1_ref, b1_ref, w2_ref, b2_ref, w3_ref, b3_ref, out_ref):
    # Feature-major: x_ref is (num_states, batch_tile); batch on the lane axis.
    x = x_ref[...]

    # fc_first + ReLU : (H, S) @ (S, bt) -> (H, bt)
    h = jnp.dot(w1_ref[...], x, preferred_element_type=jnp.float32) + b1_ref[...]
    h = jnp.maximum(h, 0.0)

    # fc_mid_layer + ReLU : (H, H) @ (H, bt) -> (H, bt)
    h = jnp.dot(w2_ref[...], h, preferred_element_type=jnp.float32) + b2_ref[...]
    h = jnp.maximum(h, 0.0)

    # TODO(synk): training-mode additive Gaussian noise (torch.normal) and the
    # 'noisy'/'bbb' last-layer variants are not reproduced; eval-mode plain
    # Linear path only.

    # fc_last_layer : (A, H) @ (H, bt) -> (A, bt).
    # w3/b3 already carry the 1/temperature scale (folded in the wrapper).
    logits = jnp.dot(w3_ref[...], h, preferred_element_type=jnp.float32) + b3_ref[...]

    # Numerically stable softmax over the action axis (sublane axis here).
    z = logits - jnp.max(logits, axis=0, keepdims=True)
    e = jnp.exp(z)
    inv = pl.reciprocal(jnp.sum(e, axis=0, keepdims=True), approx=True)  # EUP
    out_ref[...] = (e * inv).astype(out_ref.dtype)


def policy_forward(x, params, temperature):
    """x: (batch, num_states) f32.

    params: PyTorch-layout weights:
      w1 (H, S), b1 (H, 1), w2 (H, H), b2 (H, 1), w3 (A, H), b3 (A, 1).
    Returns (batch, num_actions) action probabilities.
    """
    batch, num_states = x.shape
    hidden = params["w1"].shape[0]
    num_actions = params["w3"].shape[0]

    # Fold 1/temperature into the last layer:
    #   softmax((Wx+b)/T) == softmax((W/T)x + b/T).
    inv_t = jnp.float32(1.0) / jnp.asarray(temperature, jnp.float32)
    w3 = params["w3"] * inv_t
    b3 = params["b3"] * inv_t

    # Batch tile: multiple of 128 (lane-dense).  Whole batch in one step when
    # it fits in <=512 lanes (fewer grid steps -> less per-step overhead),
    # otherwise 512-wide tiles so large batches still produce >=2 grid steps
    # for megacore sharding on v7x.
    cols128 = 128 * pl.cdiv(batch, 128)
    bt = cols128 if cols128 <= 512 else 512
    padded = bt * pl.cdiv(batch, bt)

    # Present the input feature-major and zero-pad the batch to the tile size.
    # Padded columns produce a harmless finite softmax and are sliced off below.
    xt = jnp.zeros((num_states, padded), jnp.float32).at[:, :batch].set(x.T)

    def w_spec(shape):
        # Constant block index -> weight stays VMEM-resident across grid steps.
        return pl.BlockSpec(shape, lambda i: (0, 0))

    flops_per_col = 2 * (hidden * num_states + hidden * hidden + hidden * num_actions)
    out_t = pl.pallas_call(
        _policy_kernel,
        out_shape=jax.ShapeDtypeStruct((num_actions, padded), jnp.float32),
        grid=(padded // bt,),
        in_specs=[
            pl.BlockSpec((num_states, bt), lambda i: (0, i)),
            w_spec((hidden, num_states)),
            w_spec((hidden, 1)),
            w_spec((hidden, hidden)),
            w_spec((hidden, 1)),
            w_spec((num_actions, hidden)),
            w_spec((num_actions, 1)),
        ],
        out_specs=pl.BlockSpec((num_actions, bt), lambda i: (0, i)),
        compiler_params=pltpu.CompilerParams(
            dimension_semantics=("parallel",)),  # megacore-shard batch on v7x
        cost_estimate=pl.CostEstimate(
            flops=flops_per_col * padded,
            transcendentals=num_actions * padded,
            bytes_accessed=4 * (num_states + num_actions) * padded
            + 4 * (hidden * num_states + hidden * hidden + num_actions * hidden),
        ),
    )(xt, params["w1"], params["b1"], params["w2"], params["b2"], w3, b3)

    # Layout plumbing back to (batch, num_actions) happens outside the kernel.
    return out_t[:, :batch].T


def init_params(key, num_states, num_actions, hidden=32):
    """PyTorch-style uniform(-1/sqrt(fan_in), 1/sqrt(fan_in)) init, (out, in) layout."""
    def linear(k, fan_in, fan_out):
        k_w, k_b = jax.random.split(k)
        bound = 1.0 / jnp.sqrt(jnp.float32(fan_in))
        w = jax.random.uniform(k_w, (fan_out, fan_in), jnp.float32, -bound, bound)
        b = jax.random.uniform(k_b, (fan_out, 1), jnp.float32, -bound, bound)
        return w, b

    k1, k2, k3 = jax.random.split(key, 3)
    w1, b1 = linear(k1, num_states, hidden)
    w2, b2 = linear(k2, hidden, hidden)
    w3, b3 = linear(k3, hidden, num_actions)
    return dict(w1=w1, b1=b1, w2=w2, b2=b2, w3=w3, b3=b3)


def _reference(x, p, temperature):
    h = jnp.maximum(x @ p["w1"].T + p["b1"].T, 0.0)
    h = jnp.maximum(h @ p["w2"].T + p["b2"].T, 0.0)
    logits = (h @ p["w3"].T + p["b3"].T) / temperature
    return jax.nn.softmax(logits, axis=-1)


if __name__ == "__main__":
    num_states = 8
    num_actions = 4
    batch = 8
    temperature = 1.5

    key = jax.random.PRNGKey(0)
    k_params, k_x = jax.random.split(key)
    params = init_params(k_params, num_states, num_actions)
    x = jax.random.normal(k_x, (batch, num_states), dtype=jnp.float32)

    out = policy_forward(x, params, temperature)
    out = jax.block_until_ready(out)

    ref = _reference(x, params, temperature)
    assert out.shape == (batch, num_actions)
    # approx reciprocal in the softmax denominator -> slightly looser tolerances
    assert jnp.allclose(jnp.sum(out, axis=-1), 1.0, atol=5e-3)
    assert jnp.allclose(out, ref, atol=2e-3, rtol=2e-3)

    print("KERNEL_OK")
</pallas_src>

<mosaic_0001>
module attributes {stable_mosaic.version = 11 : i64} {
  func.func @_policy_kernel(%arg0: i32, %arg1: memref<8x128xf32, #tpu.memory_space<vmem>>, %arg2: memref<32x8xf32, #tpu.memory_space<vmem>>, %arg3: memref<32x1xf32, #tpu.memory_space<vmem>>, %arg4: memref<32x32xf32, #tpu.memory_space<vmem>>, %arg5: memref<32x1xf32, #tpu.memory_space<vmem>>, %arg6: memref<4x32xf32, #tpu.memory_space<vmem>>, %arg7: memref<4x1xf32, #tpu.memory_space<vmem>>, %arg8: memref<4x128xf32, #tpu.memory_space<vmem>>) attributes {dimension_semantics = [#tpu.dimension_semantics<parallel>], iteration_bounds = array<i64: 1>, scalar_prefetch = 0 : i64, scratch_operands = 0 : i64, tpu.core_type = #tpu.core_type<tc>, window_params = [{transform_indices = @transform_0, window_bounds = array<i64: 8, 128>}, {pipeline_mode = #tpu.pipeline_mode<synchronous>, transform_indices = @transform_1, window_bounds = array<i64: 32, 8>}, {pipeline_mode = #tpu.pipeline_mode<synchronous>, transform_indices = @transform_2, window_bounds = array<i64: 32, 1>}, {pipeline_mode = #tpu.pipeline_mode<synchronous>, transform_indices = @transform_3, window_bounds = array<i64: 32, 32>}, {pipeline_mode = #tpu.pipeline_mode<synchronous>, transform_indices = @transform_4, window_bounds = array<i64: 32, 1>}, {pipeline_mode = #tpu.pipeline_mode<synchronous>, transform_indices = @transform_5, window_bounds = array<i64: 4, 32>}, {pipeline_mode = #tpu.pipeline_mode<synchronous>, transform_indices = @transform_6, window_bounds = array<i64: 4, 1>}, {transform_indices = @transform_7, window_bounds = array<i64: 4, 128>}]} {
    %c0 = arith.constant 0 : index
    %c0_0 = arith.constant 0 : index
    %0 = vector.load %arg1[%c0, %c0_0] : memref<8x128xf32, #tpu.memory_space<vmem>>, vector<8x128xf32>
    %c0_1 = arith.constant 0 : index
    %c0_2 = arith.constant 0 : index
    %1 = vector.load %arg2[%c0_1, %c0_2] : memref<32x8xf32, #tpu.memory_space<vmem>>, vector<32x8xf32>
    %cst = arith.constant dense<0.000000e+00> : vector<32x128xf32>
    %2 = tpu.matmul %1, %0, %cst {dimension_numbers = #tpu.dot_dimension_numbers<[1], [0], [0], [1], [0, 0, 1, 1], [], []>} : vector<32x8xf32>, vector<8x128xf32>, vector<32x128xf32> -> vector<32x128xf32>
    %c0_3 = arith.constant 0 : index
    %c0_4 = arith.constant 0 : index
    %3 = vector.load %arg3[%c0_3, %c0_4] : memref<32x1xf32, #tpu.memory_space<vmem>>, vector<32x1xf32>
    %4 = vector.broadcast %3 : vector<32x1xf32> to vector<32x128xf32>
    %5 = arith.addf %2, %4 : vector<32x128xf32>
    %cst_5 = arith.constant 0.000000e+00 : f32
    %6 = vector.broadcast %cst_5 : f32 to vector<32x128xf32>
    %7 = arith.maximumf %5, %6 : vector<32x128xf32>
    %c0_6 = arith.constant 0 : index
    %c0_7 = arith.constant 0 : index
    %8 = vector.load %arg4[%c0_6, %c0_7] : memref<32x32xf32, #tpu.memory_space<vmem>>, vector<32x32xf32>
    %cst_8 = arith.constant dense<0.000000e+00> : vector<32x128xf32>
    %9 = tpu.matmul %8, %7, %cst_8 {dimension_numbers = #tpu.dot_dimension_numbers<[1], [0], [0], [1], [0, 0, 1, 1], [], []>} : vector<32x32xf32>, vector<32x128xf32>, vector<32x128xf32> -> vector<32x128xf32>
    %c0_9 = arith.constant 0 : index
    %c0_10 = arith.constant 0 : index
    %10 = vector.load %arg5[%c0_9, %c0_10] : memref<32x1xf32, #tpu.memory_space<vmem>>, vector<32x1xf32>
    %11 = vector.broadcast %10 : vector<32x1xf32> to vector<32x128xf32>
    %12 = arith.addf %9, %11 : vector<32x128xf32>
    %cst_11 = arith.constant 0.000000e+00 : f32
    %13 = vector.broadcast %cst_11 : f32 to vector<32x128xf32>
    %14 = arith.maximumf %12, %13 : vector<32x128xf32>
    %c0_12 = arith.constant 0 : index
    %c0_13 = arith.constant 0 : index
    %15 = vector.load %arg6[%c0_12, %c0_13] : memref<4x32xf32, #tpu.memory_space<vmem>>, vector<4x32xf32>
    %cst_14 = arith.constant dense<0.000000e+00> : vector<4x128xf32>
    %16 = tpu.matmul %15, %14, %cst_14 {dimension_numbers = #tpu.dot_dimension_numbers<[1], [0], [0], [1], [0, 0, 1, 1], [], []>} : vector<4x32xf32>, vector<32x128xf32>, vector<4x128xf32> -> vector<4x128xf32>
    %c0_15 = arith.constant 0 : index
    %c0_16 = arith.constant 0 : index
    %17 = vector.load %arg7[%c0_15, %c0_16] : memref<4x1xf32, #tpu.memory_space<vmem>>, vector<4x1xf32>
    %18 = vector.broadcast %17 : vector<4x1xf32> to vector<4x128xf32>
    %19 = arith.addf %16, %18 : vector<4x128xf32>
    %cst_17 = arith.constant dense<0xFF800000> : vector<128xf32>
    %20 = vector.multi_reduction <maximumf>, %19, %cst_17 [0] : vector<4x128xf32> to vector<128xf32>
    %21 = vector.shape_cast %20 : vector<128xf32> to vector<1x128xf32>
    %22 = vector.broadcast %21 : vector<1x128xf32> to vector<4x128xf32>
    %23 = arith.subf %19, %22 : vector<4x128xf32>
    %24 = math.exp %23 : vector<4x128xf32>
    %cst_18 = arith.constant dense<0.000000e+00> : vector<128xf32>
    %25 = vector.multi_reduction <add>, %24, %cst_18 [0] : vector<4x128xf32> to vector<128xf32>
    %26 = vector.shape_cast %25 : vector<128xf32> to vector<1x128xf32>
    %27 = tpu.reciprocal %26 {approx = true} : vector<1x128xf32> -> vector<1x128xf32>
    %28 = vector.broadcast %27 : vector<1x128xf32> to vector<4x128xf32>
    %29 = arith.mulf %24, %28 : vector<4x128xf32>
    %c0_19 = arith.constant 0 : index
    %c0_20 = arith.constant 0 : index
    %30 = vector.load %arg8[%c0_19, %c0_20] : memref<4x128xf32, #tpu.memory_space<vmem>>, vector<4x128xf32>
    tpu.vector_store %arg8[%c0_19, %c0_20], %29 {strides = array<i32>} : memref<4x128xf32, #tpu.memory_space<vmem>>, vector<4x128xf32>,
    return
  }
  func.func @transform_0(%arg0: i32) -> (i32, i32) {
    %c0_i32 = arith.constant 0 : i32
    %c0_i32_0 = arith.constant 0 : i32
    return %c0_i32, %arg0 : i32, i32
  }
  func.func @transform_1(%arg0: i32) -> (i32, i32) {
    %c0_i32 = arith.constant 0 : i32
    %c0_i32_0 = arith.constant 0 : i32
    %c0_i32_1 = arith.constant 0 : i32
    return %c0_i32, %c0_i32_0 : i32, i32
  }
  func.func @transform_2(%arg0: i32) -> (i32, i32) {
    %c0_i32 = arith.constant 0 : i32
    %c0_i32_0 = arith.constant 0 : i32
    %c0_i32_1 = arith.constant 0 : i32
    return %c0_i32, %c0_i32_0 : i32, i32
  }
  func.func @transform_3(%arg0: i32) -> (i32, i32) {
    %c0_i32 = arith.constant 0 : i32
    %c0_i32_0 = arith.constant 0 : i32
    %c0_i32_1 = arith.constant 0 : i32
    return %c0_i32, %c0_i32_0 : i32, i32
  }
  func.func @transform_4(%arg0: i32) -> (i32, i32) {
    %c0_i32 = arith.constant 0 : i32
    %c0_i32_0 = arith.constant 0 : i32
    %c0_i32_1 = arith.constant 0 : i32
    return %c0_i32, %c0_i32_0 : i32, i32
  }
  func.func @transform_5(%arg0: i32) -> (i32, i32) {
    %c0_i32 = arith.constant 0 : i32
    %c0_i32_0 = arith.constant 0 : i32
    %c0_i32_1 = arith.constant 0 : i32
    return %c0_i32, %c0_i32_0 : i32, i32
  }
  func.func @transform_6(%arg0: i32) -> (i32, i32) {
    %c0_i32 = arith.constant 0 : i32
    %c0_i32_0 = arith.constant 0 : i32
    %c0_i32_1 = arith.constant 0 : i32
    return %c0_i32, %c0_i32_0 : i32, i32
  }
  func.func @transform_7(%arg0: i32) -> (i32, i32) {
    %c0_i32 = arith.constant 0 : i32
    %c0_i32_0 = arith.constant 0 : i32
    return %c0_i32, %arg0 : i32, i32
  }
}

</mosaic_0001>

<bundles_post_ra>
// kernel: tpu_custom_call.1
= control target key start
LH: loop header
LB: loop body
LE: loop exit
PB: predicated region body
PF: predicated region fallthrough
CT: control target
= control target key end

     0   :  { %vm56_vm0 = vcmask 64512   ;;  %v495_v5 = vmov 0   ;;  %s608_s0 = inlined_call_operand.vmem [shape: f32[8,128], index: 0, kind: input, shape index: {}]   ;;  %s609_s1 = inlined_call_operand.vmem [shape: f32[32,8], index: 1, kind: input, shape index: {}]   ;;  %s610_s2 = inlined_call_operand.vmem [shape: f32[32,1], index: 2, kind: input, shape index: {}]   ;;  %s611_s3 = inlined_call_operand.vmem [shape: f32[32,32], index: 3, kind: input, shape index: {}]   ;;  %s612_s4 = inlined_call_operand.vmem [shape: f32[32,1], index: 4, kind: input, shape index: {}]   ;;  %s613_s5 = inlined_call_operand.vmem [shape: f32[4,32], index: 5, kind: input, shape index: {}]   ;;  %s614_s6 = inlined_call_operand.vmem [shape: f32[4,1], index: 6, kind: input, shape index: {}]   ;;  %s615_s7 = inlined_call_operand.hbm [shape: f32[4,128], index: 7, kind: output, shape index: {}]  }
   0x1   :  { %v27_v0 = vld [vmem:[%s608_s0] sm:$0xff]  ;;  %v29_v2 = vld [vmem:[%s609_s1 + $0x8] sm:$0xff]  ;;  %v30_v3 = vld [vmem:[%s609_s1 + $0x10] sm:$0xff]  ;;  %467 = vset.pattern.permute.xlu0 %v495_v5  ;;  %468 = vset.pattern.permute.xlu1 %v495_v5 }
   0x2   :  { %v28_v1 = vld [vmem:[%s609_s1] sm:$0xff]  ;;  %430 = vmatprep.subr.mxu0 %v27_v0  ;;  %v35_v4 = vld [vmem:[%s610_s2 + $0x18] sm:$0xff]  ;;  %v33_v6 = vld [vmem:[%s610_s2 + $0x8] sm:$0xff] }
   0x3   :  { %432 = vmatprep.mubr.msk.f32.mxu0 %vm56_vm0, %v28_v1  ;;  %431 = vmatpush3.msra.mxu0 %v27_v0  ;;  %v31_v7 = vld [vmem:[%s609_s1 + $0x18] sm:$0xff]  ;;  %v34_v8 = vld [vmem:[%s610_s2 + $0x10] sm:$0xff] }
   0x4   :  { %433 = vmatmul.mubr.msk.f32.vlgmr.msra.gmra.mxu0 %vm56_vm0, %v29_v2  ;;  %53 = vperm.xlu0 %467, %v35_v4  }
   0x5   :  { %435 = vmatprep.mubr.msk.f32.mxu0 %vm56_vm0, %v30_v3 }
   0x6   :  { %12 = vsyncpa [#allocation3], 0  ;;  %43 = vperm.xlu1 %468, %v33_v6   ;;  %v32_v9 = vld [vmem:[%s610_s2] sm:$0xff]  ;;  %v165_v10 = vld [vmem:[%s612_s4 + $0x18] sm:$0xff]  ;;  %vm186_vm1 = vcmask 261120   ;;  %v496_v35 = vmov 0.0  }
   0x7   :  { %v164_v11 = vld [vmem:[%s612_s4 + $0x10] sm:$0xff]  ;;  %v163_v12 = vld [vmem:[%s612_s4 + $0x8] sm:$0xff]  ;;  %v162_v13 = vld [vmem:[%s612_s4] sm:$0xff]  ;;  %452 = vmatprep.subr.mxu0 %v496_v35  ;;  %vm497_vm2 = vmmov 0   ;;  %vm368_vm3 = vcmask 1043456  }
   0x8   :  { %436 = vmatmul.mubr.msk.f32.gmra.mxu0 %vm56_vm0, %v31_v7  ;;  %48 = vperm.xlu0 %467, %v34_v8   ;;  %v289_v14 = vld [vmem:[%s614_s6] sm:$0xf]  ;;  %v159_v32 = vld [vmem:[%s611_s3 + $0x8] sm:$0xff]  ;;  %v160_v33 = vld [vmem:[%s611_s3 + $0x10] sm:$0xff] }
   0x9   :  { %v158_v15 = vld [vmem:[%s611_s3] sm:$0xff]  ;;  %v161_v34 = vld [vmem:[%s611_s3 + $0x18] sm:$0xff]  ;;  %460 = vmatprep.mubr.msk.f32.mxu0 %vm497_vm2, %v496_v35 }
   0xa   :  { %38 = vperm.xlu1 %468, %v32_v9   ;;  %446 = vmatprep.mubr.msk.f32.mxu1 %vm186_vm1, %v158_v15  ;;  %v288_v52 = vld [vmem:[%s613_s5] sm:$0xf]  ;;  %s498_s5 = smov [#allocation2]  }
   0xb   :  { %s395_s10 = sshll.u32 %s498_s5, 4  ;;  %s396_s10 = int_to_ptr.vmem [resolvable:$true] %s395_s10 }
   0xc   :  { %183 = vperm.xlu0 %467, %v165_v10   ;;  %s473_s0 = scalar_lea.vmem %s396_s10, 64  ;;  %p478_p1 = scmp.lt.s32.totalorder %s396_s10, %s396_s10 }
   0xd   :  { %p474_p0 = scmp.ne.s32.totalorder %s396_s10, %s473_s0  ;;  %p479_p2 = scmp.lt.s32.totalorder %s473_s0, %s473_s0 }
   0xe   :  { %178 = vperm.xlu1 %468, %v164_v11  }
   0xf   :  { %p480_p3 = por %p479_p2, %p478_p1 }
  0x10   :  { %173 = vperm.xlu0 %467, %v163_v12  }
  0x11   :  { %p481_p4 = pnand %p480_p3, %p474_p0 }
  0x12   :  { %168 = vperm.xlu1 %468, %v162_v13  }
  0x14   :  { %292 = vperm.xlu0 %467, %v289_v14  }
  0x7f   :  { %v54_v16 = vpop.permute.xlu0 %53 }
  0x81   :  { %v44_v18 = vpop.permute.xlu1 %43 }
  0x83   :  { %v49_v22 = vpop.permute.xlu0 %48 }
  0x85   :  { %v39_v27 = vpop.permute.xlu1 %38 }
  0x87   :  { %v184_v36 = vpop.permute.xlu0 %183 }
  0x89   :  { %v179_v38 = vpop.permute.xlu1 %178 }
  0x8b   :  { %v174_v42 = vpop.permute.xlu0 %173 }
  0x8d   :  { %v169_v47 = vpop.permute.xlu1 %168 }
  0x8f   :  { %v293_v53 = vpop.permute.xlu0 %292 }
  0xc4   :  { %v434_v17 = vpop.f32.mrf.mxu0 }
  0xc5   :  { %v141_v24 = vadd.f32 %v434_v17, %v44_v18 }
  0xc6   :  { %v135_v19 = vpop.f32.mrf.mxu0 }
  0xc7   :  { %v136_v28 = vadd.f32 %v135_v19, %v39_v27  ;;  %v155_v30 = vmax.f32 %v141_v24, 0.0 }
  0xc8   :  { %v437_v20 = vpop.f32.mrf.mxu0 }
  0xc9   :  { %v151_v21 = vadd.f32 %v437_v20, %v54_v16  ;;  %v154_v31 = vmax.f32 %v136_v28, 0.0 }
  0xca   :  { %v145_v23 = vpop.f32.mrf.mxu0 }
  0xcb   :  { %v157_v25 = vmax.f32 %v151_v21, 0.0  ;;  %v146_v26 = vadd.f32 %v145_v23, %v49_v22 }
  0xcd   :  { %v156_v29 = vmax.f32 %v146_v26, 0.0  ;;  %438 = vmatprep.subr.mxu1 %v157_v25 }
  0xce   :  { %439 = vmatpush3.msra.mxu1 %v157_v25 }
  0xcf   :  { %440 = vmatprep.subr.mxu1 %v156_v29 }
  0xd0   :  { %441 = vmatpush3.msra.mxu1 %v156_v29 }
  0xd1   :  { %442 = vmatprep.subr.mxu1 %v155_v30 }
  0xd2   :  { %443 = vmatpush3.msra.mxu1 %v155_v30 }
  0xd3   :  { %444 = vmatprep.subr.mxu1 %v154_v31 }
  0xd4   :  { %445 = vmatpush3.msra.mxu1 %v154_v31 }
  0xd5   :  { %447 = vmatmul.mubr.msk.f32.vlgmr.msra.gmra.mxu1 %vm186_vm1, %v159_v32 }
  0xd6   :  { %449 = vmatprep.mubr.msk.f32.mxu1 %vm186_vm1, %v160_v33 }
  0xd9   :  { %450 = vmatmul.mubr.msk.f32.gmra.mxu1 %vm186_vm1, %v161_v34 }
 0x195   :  { %v448_v37 = vpop.f32.mrf.mxu1 }
 0x196   :  { %v271_v44 = vadd.f32 %v448_v37, %v174_v42 }
 0x197   :  { %v265_v39 = vpop.f32.mrf.mxu1 }
 0x198   :  { %v266_v48 = vadd.f32 %v265_v39, %v169_v47  ;;  %v285_v50 = vmax.f32 %v271_v44, 0.0 }
 0x199   :  { %v451_v40 = vpop.f32.mrf.mxu1 }
 0x19a   :  { %v281_v41 = vadd.f32 %v451_v40, %v184_v36  ;;  %v284_v51 = vmax.f32 %v266_v48, 0.0 }
 0x19b   :  { %v275_v43 = vpop.f32.mrf.mxu1 }
 0x19c   :  { %v287_v45 = vmax.f32 %v281_v41, 0.0  ;;  %v276_v46 = vadd.f32 %v275_v43, %v179_v38 }
 0x19e   :  { %v286_v49 = vmax.f32 %v276_v46, 0.0  ;;  %453 = vmatpush3.msra.mxu0 %v287_v45 }
 0x19f   :  { %454 = vmatprep.subr.mxu0 %v496_v35 }
 0x1a0   :  { %455 = vmatpush3.msra.mxu0 %v286_v49 }
 0x1a1   :  { %456 = vmatprep.subr.mxu0 %v496_v35 }
 0x1a2   :  { %457 = vmatpush3.msra.mxu0 %v285_v50 }
 0x1a3   :  { %458 = vmatprep.subr.mxu0 %v496_v35 }
 0x1a4   :  { %459 = vmatpush3.msra.mxu0 %v284_v51 }
 0x1a5   :  { %461 = vmatmul.mubr.msk.f32.vlgmr.msra.gmra.mxu0 %vm186_vm1, %v288_v52 }
 0x265   :  { %v364_v54 = vpop.f32.mrf.mxu0 }
 0x266   :  { %v365_v55 = vadd.f32 %v364_v54, %v293_v53 }
 0x267   :  { %v462_v56 = vpop.f32.mrf.mxu0 }
 0x268   :  { %v369_v57 = vsel %vm368_vm3, %v365_v55, -inf }
 0x269   :  { %v370_v58 = vrot.slane %v369_v57, 4 }
 0x26b   :  { %v371_v59 = vmax.f32 %v369_v57, %v370_v58 }
 0x26d   :  { %v372_v60 = vrot.slane %v371_v59, 2 }
 0x26f   :  { %v373_v61 = vmax.f32 %v371_v59, %v372_v60 }
 0x271   :  { %v374_v62 = vrot.slane %v373_v61, 1 }
 0x273   :  { %v375_v63 = vmax.f32 %v373_v61, %v374_v62 }
 0x275   :  { %v376_v0 = vsub.f32 %v365_v55, %v375_v63 }
 0x277   :  { %v377_v1 = vmul.f32 1.442695, %v376_v0 }
 0x279   :  { %469 = vpow2.f32 %v377_v1 }
 0x286   :  { %v470_v2 = vpop.eup %469 }
 0x287   :  { %v379_v3 = vsel %vm368_vm3, %v470_v2, 0.0 }
 0x288   :  { %v380_v4 = vrot.slane %v379_v3, 4 }
 0x28a   :  { %v381_v5 = vadd.f32 %v380_v4, %v379_v3 }
 0x28c   :  { %v382_v6 = vrot.slane %v381_v5, 2 }
 0x28e   :  { %v383_v7 = vadd.f32 %v382_v6, %v381_v5 }
 0x290   :  { %v384_v8 = vrot.slane %v383_v7, 1 }
 0x292   :  { %v385_v9 = vadd.f32 %v384_v8, %v383_v7 }
 0x294   :  { %471 = vrcp.f32 %v385_v9 }
 0x2a1   :  { %v472_v10 = vpop.eup %471 }
 0x2a2   :  { %v387_v11 = vmul.f32 %v472_v10, %v470_v2 }
 0x2a4   :  { %388 = vst [vmem:[#allocation2] sm:$0xf] %v387_v11 }
 0x2a5   :  { %484 = shalt.err (!%p481_p4)
}
 0x2a6   :  { %398 = dma.vmem_to_hbm [thread:$0]  %s396_s10, 64, %s615_s7, [#allocation3]  }
 0x2a7   :  { %493 = dma.done.wait [#allocation3], 64  }
 0x2a8   :  { %494 = vsyncadd [#allocation3], 4294967232 }
 0x2a9   :  { %402 = vsyncpa [#allocation3], 1 }

</bundles_post_ra>
